<compile_context>
chip_gen: v5e
topology: v5e:2x2
jax: 0.10.0
libtpu: 0.0.40
codegen_flags: <defaults>
</compile_context>

<pallas_src>
import jax
import jax.numpy as jnp
from jax.experimental import pallas as pl
from jax.experimental.pallas import tpu as pltpu

EPS = 1e-5  # nn.BatchNorm2d default eps


def bn_stats_kernel(x_ref, stats_ref):
    """Pass 1: accumulate per-channel sum / sumsq over the batch grid.

    x_ref:     (1, H, W, C) block of the NHWC input.
    stats_ref: (2, C) f32 accumulator (row 0 = sum, row 1 = sum of squares);
               same output block for every grid step -> stays VMEM-resident.
    """
    @pl.when(pl.program_id(0) == 0)
    def _init():
        stats_ref[...] = jnp.zeros_like(stats_ref)

    _, H, W, C = x_ref.shape
    # Merge the three MAJOR dims only (cheap, no lane movement); C stays in lanes.
    xf = x_ref[...].astype(jnp.float32).reshape(H * W, C)
    s = jnp.sum(xf, axis=0, keepdims=True)            # (1, C)
    ss = jnp.sum(xf * xf, axis=0, keepdims=True)      # (1, C)
    # Single read-modify-write of the accumulator per step.
    stats_ref[...] += jnp.concatenate([s, ss], axis=0)


def bn_relu_conv_concat_kernel(x_ref, w_ref, scale_ref, bias_ref, out_ref,
                               pad_ref, col_ref):
    """Pass 2: out = concat(x, conv3x3(relu(x * scale + bias))) for one image.

    x_ref:      (1, H, W, C) NHWC input block.
    w_ref:      (9*C, G) conv weight (HWIO flattened) -> conv as a single matmul.
    scale/bias: (1, C) BN affine folded with the GLOBAL batch statistics (f32).
    out_ref:    (1, H, W, C+G) fused NHWC output (x passthrough + conv).
    pad_ref:    VMEM scratch (H+2, W+2, C), input dtype (zero-padded halo).
    col_ref:    VMEM scratch (H*W, 9*C), input dtype (im2col buffer).
    """
    _, H, W, C = x_ref.shape
    G = w_ref.shape[1]

    x_img = x_ref[0]                                             # (H, W, C)
    # torch.cat((x, out), 1): first C channels are the ORIGINAL input.
    out_ref[0, :, :, 0:C] = x_img.astype(out_ref.dtype)

    # BN (precomputed global scale/bias) + ReLU: elementwise in f32, cast to
    # the input dtype only at the matmul boundary.
    xf = x_img.astype(jnp.float32)
    scale = scale_ref[...].reshape(1, 1, C)
    bias = bias_ref[...].reshape(1, 1, C)
    t = jnp.maximum(xf * scale + bias, 0.0).astype(pad_ref.dtype)

    # Zero only the 1-wide halo every step (scratch interior is fully
    # overwritten each step).  NOTE: must be per-step, not pl.when(pid==0):
    # the batch axis is "parallel" (megacore) so program_id 0 may never run
    # on the second core.
    zrow = jnp.zeros((1, W + 2, C), pad_ref.dtype)
    zcol = jnp.zeros((H + 2, 1, C), pad_ref.dtype)
    pad_ref[0:1, :, :] = zrow
    pad_ref[H + 1:H + 2, :, :] = zrow
    pad_ref[:, 0:1, :] = zcol
    pad_ref[:, W + 1:W + 2, :] = zcol
    pad_ref[1:H + 1, 1:W + 1, :] = t

    # im2col: pack the 9 shifted taps along the channel axis, then do ONE
    # MXU matmul with K = 9*C (instead of 9 tiny K=C matmuls + 8 chained adds).
    # Explicit VMEM im2col buffer keeps the (H*W, 9*C) matrix out of vregs.
    for tap in range(9):
        dh, dw = tap // 3, tap % 3
        col_ref[:, tap * C:(tap + 1) * C] = (
            pad_ref[dh:dh + H, dw:dw + W, :].reshape(H * W, C))

    acc = jnp.dot(col_ref[...], w_ref[...],
                  preferred_element_type=jnp.float32)            # (H*W, G)

    # Conv result goes into channels [C:C+G] of the fused output block.
    # (H*W, G) -> (H, W, G) only splits the major dim: cheap relayout.
    out_ref[0, :, :, C:C + G] = acc.reshape(H, W, G).astype(out_ref.dtype)


def single_layer(x_nchw, weight_oihw, gamma, beta):
    """Pallas implementation of SingleLayer.forward. Input/output in NCHW."""
    N, C, H, W = x_nchw.shape
    G = weight_oihw.shape[0]

    x_nhwc = jnp.transpose(x_nchw, (0, 2, 3, 1))                 # (N, H, W, C)
    # OIHW -> HWIO -> (9*C, G); matmul operands kept in the input dtype.
    w_flat = jnp.transpose(weight_oihw, (2, 3, 1, 0)).reshape(9 * C, G)
    w_flat = w_flat.astype(x_nchw.dtype)

    # ---- Pass 1: global BN batch statistics (reduction across the grid). ----
    stats = pl.pallas_call(
        bn_stats_kernel,
        out_shape=jax.ShapeDtypeStruct((2, C), jnp.float32),
        grid=(N,),
        in_specs=[pl.BlockSpec((1, H, W, C), lambda n: (n, 0, 0, 0))],
        out_specs=pl.BlockSpec((2, C), lambda n: (0, 0)),
        compiler_params=pltpu.CompilerParams(
            dimension_semantics=("arbitrary",)),
    )(x_nhwc)

    cnt = jnp.float32(N * H * W)
    mean = stats[0] / cnt
    var = stats[1] / cnt - mean * mean                 # biased (training-mode BN)
    scale = gamma.astype(jnp.float32) * jax.lax.rsqrt(var + EPS)
    bias = beta.astype(jnp.float32) - mean * scale

    # ---- Pass 2: BN + ReLU + conv + channel concat, pipelined over batch. ---
    # TODO(synk): for very large H*W*C add an H-tiled grid axis with a 1-row
    # halo (manual DMA) so each block stays within per-core VMEM (v7x: 64 MiB).
    out_nhwc = pl.pallas_call(
        bn_relu_conv_concat_kernel,
        out_shape=jax.ShapeDtypeStruct((N, H, W, C + G), x_nchw.dtype),
        grid=(N,),
        in_specs=[
            pl.BlockSpec((1, H, W, C), lambda n: (n, 0, 0, 0)),
            pl.BlockSpec((9 * C, G), lambda n: (0, 0)),
            pl.BlockSpec((1, C), lambda n: (0, 0)),
            pl.BlockSpec((1, C), lambda n: (0, 0)),
        ],
        out_specs=pl.BlockSpec((1, H, W, C + G), lambda n: (n, 0, 0, 0)),
        scratch_shapes=[
            pltpu.VMEM((H + 2, W + 2, C), x_nchw.dtype),
            pltpu.VMEM((H * W, 9 * C), x_nchw.dtype),
        ],
        compiler_params=pltpu.CompilerParams(
            dimension_semantics=("parallel",)),
    )(x_nhwc, w_flat, scale.reshape(1, C), bias.reshape(1, C))

    return jnp.transpose(out_nhwc, (0, 3, 1, 2))                 # back to NCHW


def reference_forward(x_nchw, weight_oihw, gamma, beta):
    """Pure-JAX reference mirroring the PyTorch forward (training-mode BN)."""
    xf = x_nchw.astype(jnp.float32)
    mean = jnp.mean(xf, axis=(0, 2, 3), keepdims=True)
    var = jnp.var(xf, axis=(0, 2, 3), keepdims=True)             # biased
    t = (xf - mean) * jax.lax.rsqrt(var + EPS)
    t = t * gamma.reshape(1, -1, 1, 1) + beta.reshape(1, -1, 1, 1)
    t = jnp.maximum(t, 0.0)
    conv = jax.lax.conv_general_dilated(
        t, weight_oihw.astype(jnp.float32),
        window_strides=(1, 1), padding=((1, 1), (1, 1)),
        dimension_numbers=("NCHW", "OIHW", "NCHW"))
    return jnp.concatenate([xf, conv], axis=1)


if __name__ == "__main__":
    N, C, H, W, G = 2, 4, 16, 16, 8   # nChannels=4, growthRate=8

    key = jax.random.PRNGKey(0)
    k_x, k_w, k_g, k_b = jax.random.split(key, 4)
    x = jax.random.normal(k_x, (N, C, H, W), jnp.float32)
    conv_w = jax.random.normal(k_w, (G, C, 3, 3), jnp.float32) * 0.1
    # BatchNorm affine params (PyTorch inits gamma=1, beta=0; perturb slightly
    # so the affine path is exercised — still deterministic).
    gamma = 1.0 + 0.1 * jax.random.normal(k_g, (C,), jnp.float32)
    beta = 0.05 * jax.random.normal(k_b, (C,), jnp.float32)

    out = single_layer(x, conv_w, gamma, beta)
    out = jax.block_until_ready(out)

    ref = reference_forward(x, conv_w, gamma, beta)
    assert out.shape == (N, C + G, H, W), out.shape
    assert jnp.allclose(out, ref, atol=1e-4, rtol=1e-4), (
        float(jnp.max(jnp.abs(out - ref))))

    print("KERNEL_OK")
</pallas_src>

<mosaic_0001>
module attributes {stable_mosaic.version = 11 : i64} {
  func.func @bn_stats_kernel(%arg0: i32, %arg1: memref<1x16x16x4xf32, #tpu.memory_space<vmem>>, %arg2: memref<2x4xf32, #tpu.memory_space<vmem>>) attributes {dimension_semantics = [#tpu.dimension_semantics<arbitrary>], iteration_bounds = array<i64: 2>, scalar_prefetch = 0 : i64, scratch_operands = 0 : i64, tpu.core_type = #tpu.core_type<tc>, window_params = [{transform_indices = @transform_0, window_bounds = array<i64: 1, 16, 16, 4>}, {pipeline_mode = #tpu.pipeline_mode<synchronous>, transform_indices = @transform_1, window_bounds = array<i64: 2, 4>}]} {
    %c0_i32 = arith.constant 0 : i32
    %0 = arith.cmpi eq, %arg0, %c0_i32 : i32
    %1 = arith.extui %0 : i1 to i32
    %c0_i32_0 = arith.constant 0 : i32
    %2 = arith.cmpi ne, %1, %c0_i32_0 : i32
    scf.if %2 {
      %cst_9 = arith.constant 0.000000e+00 : f32
      %14 = vector.broadcast %cst_9 : f32 to vector<2x4xf32>
      %c0_10 = arith.constant 0 : index
      %c0_11 = arith.constant 0 : index
      %15 = vector.load %arg2[%c0_10, %c0_11] : memref<2x4xf32, #tpu.memory_space<vmem>>, vector<2x4xf32>
      tpu.vector_store %arg2[%c0_10, %c0_11], %14 {strides = array<i32>} : memref<2x4xf32, #tpu.memory_space<vmem>>, vector<2x4xf32>,
    } else {
    }
    %c0 = arith.constant 0 : index
    %c0_1 = arith.constant 0 : index
    %c0_2 = arith.constant 0 : index
    %c0_3 = arith.constant 0 : index
    %3 = vector.load %arg1[%c0, %c0_1, %c0_2, %c0_3] : memref<1x16x16x4xf32, #tpu.memory_space<vmem>>, vector<1x16x16x4xf32>
    %4 = vector.shape_cast %3 : vector<1x16x16x4xf32> to vector<256x4xf32>
    %cst = arith.constant dense<0.000000e+00> : vector<4xf32>
    %5 = vector.multi_reduction <add>, %4, %cst [0] : vector<256x4xf32> to vector<4xf32>
    %6 = vector.shape_cast %5 : vector<4xf32> to vector<1x4xf32>
    %7 = arith.mulf %4, %4 : vector<256x4xf32>
    %cst_4 = arith.constant dense<0.000000e+00> : vector<4xf32>
    %8 = vector.multi_reduction <add>, %7, %cst_4 [0] : vector<256x4xf32> to vector<4xf32>
    %9 = vector.shape_cast %8 : vector<4xf32> to vector<1x4xf32>
    %c0_5 = arith.constant 0 : index
    %c0_6 = arith.constant 0 : index
    %10 = vector.load %arg2[%c0_5, %c0_6] : memref<2x4xf32, #tpu.memory_space<vmem>>, vector<2x4xf32>
    %11 = tpu.concatenate %6, %9 in 0 : vector<1x4xf32>, vector<1x4xf32> -> vector<2x4xf32>
    %12 = arith.addf %10, %11 : vector<2x4xf32>
    %c0_7 = arith.constant 0 : index
    %c0_8 = arith.constant 0 : index
    %13 = vector.load %arg2[%c0_7, %c0_8] : memref<2x4xf32, #tpu.memory_space<vmem>>, vector<2x4xf32>
    tpu.vector_store %arg2[%c0_7, %c0_8], %12 {strides = array<i32>} : memref<2x4xf32, #tpu.memory_space<vmem>>, vector<2x4xf32>,
    return
  }
  func.func @transform_0(%arg0: i32) -> (i32, i32, i32, i32) {
    %c0_i32 = arith.constant 0 : i32
    %c0_i32_0 = arith.constant 0 : i32
    %c0_i32_1 = arith.constant 0 : i32
    %c0_i32_2 = arith.constant 0 : i32
    return %arg0, %c0_i32, %c0_i32_0, %c0_i32_1 : i32, i32, i32, i32
  }
  func.func @transform_1(%arg0: i32) -> (i32, i32) {
    %c0_i32 = arith.constant 0 : i32
    %c0_i32_0 = arith.constant 0 : i32
    %c0_i32_1 = arith.constant 0 : i32
    return %c0_i32, %c0_i32_0 : i32, i32
  }
}

</mosaic_0001>

<bundles_post_ra>
// kernel: tpu_custom_call.1
= control target key start
LH: loop header
LB: loop body
LE: loop exit
PB: predicated region body
PF: predicated region fallthrough
CT: control target
= control target key end

     0   :  { %6 = vsyncpa [#allocation3], 0  ;;  %s446_s6 = smov 0   ;;  %s567_s0 = inlined_call_operand.vmem [shape: f32[2,16,16,4], index: 0, kind: input, shape index: {}]   ;;  %s568_s1 = inlined_call_operand.hbm [shape: f32[2,4], index: 1, kind: output, shape index: {}]  }
   0x1 LB: > { %s452_s7 = sadd.s32 4294967295, %s432_s6   ;;  %p369_p0 = scmp.ge.s32.totalorder %s432_s6, 1  ;;  %s432_s6 = sphi %s446_s6, %s12_s6  }
   0x2   : > { %p83_p1 = scmp.lt.s32.totalorder %s432_s6, 3 }
   0x4   : > { %p84_p2 = pnand %p369_p0, %p83_p1 }
   0x5   : > { %p98_p3 = scmp.lt.s32.totalorder (!%p84_p2), %s452_s7, 1  ;;  %p372_p4 = scmp.ne.s32.totalorder (!%p84_p2), %s452_s7, 0 }
   0x6   : > { %87 = sbr.rel (%p84_p2) target bundleno = 106 (0x6a), region = 24 }
   0xb   : > { %s99_s8 = scalar_select %p98_p3, %s452_s7, 1 }
   0xc   : > { %106 = sbr.rel (%p372_p4) target bundleno = 19 (0x13), region = 28 }
   0xd   : > { %s377_s9 = sshll.u32 %s99_s8, 8 }
   0xe   : > { %s461_s12 = scalar_lea.vmem %s567_s0, %s377_s9 }
  0x11   : > { %vm107_vm0 = vcmask 25600   ;;  %v434_v0 = vmov 0.0  }
  0x12   : > { %108 = vst.msk [vmem:[#allocation2] sm:$0x3] %vm107_vm0, %v434_v0 }
  0x13 PF: > { %v109_v1 = vld [vmem:[%s461_s12] sm:$0xff]  ;;  %v110_v2 = vld [vmem:[%s461_s12 + $0x8] sm:$0xff]  ;;  %v111_v3 = vld [vmem:[%s461_s12 + $0x10] sm:$0xff]  ;;  %vm141_vm1 = vcmask 31744   ;;  %vm313_vm2 = vcmask 1040384   ;;  %s435_s13 = smov [#allocation2]  }
  0x14   : > { %v142_v4 = vsel %vm141_vm1, %v109_v1, 0.0  ;;  %v143_v5 = vsel %vm141_vm1, %v110_v2, 0.0  ;;  %v145_v6 = vsel %vm141_vm1, %v111_v3, 0.0  ;;  %v112_v7 = vld [vmem:[%s461_s12 + $0x18] sm:$0xff]  ;;  %v113_v10 = vld [vmem:[%s461_s12 + $0x20] sm:$0xff]  ;;  %v114_v13 = vld [vmem:[%s461_s12 + $0x28] sm:$0xff]  ;;  %v211_v21 = vmul.f32 %v109_v1, %v109_v1 }
  0x15   : > { %v144_v8 = vadd.f32 %v143_v5, %v142_v4  ;;  %v147_v9 = vsel %vm141_vm1, %v112_v7, 0.0  ;;  %v149_v12 = vsel %vm141_vm1, %v113_v10, 0.0  ;;  %v151_v15 = vsel %vm141_vm1, %v114_v13, 0.0  ;;  %v115_v16 = vld [vmem:[%s461_s12 + $0x30] sm:$0xff]  ;;  %v116_v19 = vld [vmem:[%s461_s12 + $0x38] sm:$0xff]  ;;  %v117_v25 = vld [vmem:[%s461_s12 + $0x40] sm:$0xff] }
  0x16   : > { %v153_v18 = vsel %vm141_vm1, %v115_v16, 0.0  ;;  %v155_v22 = vsel %vm141_vm1, %v116_v19, 0.0  ;;  %v212_v23 = vmul.f32 %v110_v2, %v110_v2  ;;  %v213_v24 = vmul.f32 %v111_v3, %v111_v3  ;;  %v118_v29 = vld [vmem:[%s461_s12 + $0x48] sm:$0xff]  ;;  %v119_v36 = vld [vmem:[%s461_s12 + $0x50] sm:$0xff]  ;;  %v120_v42 = vld [vmem:[%s461_s12 + $0x58] sm:$0xff]  ;;  %s324_s14 = sshll.u32 %s435_s13, 4  ;;  %s325_s14 = int_to_ptr.vmem [resolvable:$true] %s324_s14 }
  0x17   : > { %v146_v11 = vadd.f32 %v145_v6, %v144_v8  ;;  %v157_v27 = vsel %vm141_vm1, %v117_v25, 0.0  ;;  %v214_v28 = vmul.f32 %v112_v7, %v112_v7  ;;  %v243_v31 = vsel %vm141_vm1, %v211_v21, 0.0  ;;  %v121_v48 = vld [vmem:[%s461_s12 + $0x60] sm:$0xff]  ;;  %v122_v54 = vld [vmem:[%s461_s12 + $0x68] sm:$0xff]  ;;  %v123_v60 = vld [vmem:[%s461_s12 + $0x70] sm:$0xff]  ;;  %s326_s17 = sshll.u32 %s568_s1, 4  ;;  %s327_s17 = int_to_ptr.hbm [resolvable:$true] %s326_s17 }
  0x18   : > { %v159_v32 = vsel %vm141_vm1, %v118_v29, 0.0  ;;  %v215_v33 = vmul.f32 %v113_v10, %v113_v10  ;;  %v244_v34 = vsel %vm141_vm1, %v212_v23, 0.0  ;;  %v246_v35 = vsel %vm141_vm1, %v213_v24, 0.0  ;;  %v124_v2 = vld [vmem:[%s461_s12 + $0x78] sm:$0xff]  ;;  %v125_v8 = vld [vmem:[%s461_s12 + $0x80] sm:$0xff]  ;;  %p382_p5 = scmp.eq.s32.totalorder %s452_s7, 1 }
  0x19   : > { %v148_v14 = vadd.f32 %v147_v9, %v146_v11  ;;  %v245_v38 = vadd.f32 %v244_v34, %v243_v31  ;;  %v161_v39 = vsel %vm141_vm1, %v119_v36, 0.0  ;;  %v216_v40 = vmul.f32 %v114_v13, %v114_v13 }
  0x1a   : > { %v248_v41 = vsel %vm141_vm1, %v214_v28, 0.0  ;;  %v163_v45 = vsel %vm141_vm1, %v120_v42, 0.0  ;;  %v217_v46 = vmul.f32 %v115_v16, %v115_v16  ;;  %v250_v47 = vsel %vm141_vm1, %v215_v33, 0.0 }
  0x1b   : > { %v150_v17 = vadd.f32 %v149_v12, %v148_v14  ;;  %v247_v44 = vadd.f32 %v246_v35, %v245_v38  ;;  %v165_v51 = vsel %vm141_vm1, %v121_v48, 0.0  ;;  %v218_v52 = vmul.f32 %v116_v19, %v116_v19  ;;  %v126_v14 = vld [vmem:[%s461_s12 + $0x88] sm:$0xff] }
  0x1c   : > { %v252_v53 = vsel %vm141_vm1, %v216_v40, 0.0  ;;  %v167_v57 = vsel %vm141_vm1, %v122_v54, 0.0  ;;  %v219_v58 = vmul.f32 %v117_v25, %v117_v25  ;;  %v254_v59 = vsel %vm141_vm1, %v217_v46, 0.0  ;;  %v130_v38 = vld [vmem:[%s461_s12 + $0xa8] sm:$0xff] }
  0x1d   : > { %v152_v20 = vadd.f32 %v151_v15, %v150_v17  ;;  %v249_v50 = vadd.f32 %v248_v41, %v247_v44  ;;  %v169_v63 = vsel %vm141_vm1, %v123_v60, 0.0  ;;  %v220_v0 = vmul.f32 %v118_v29, %v118_v29  ;;  %v131_v44 = vld [vmem:[%s461_s12 + $0xb0] sm:$0xff] }
  0x1e   : > { %v256_v1 = vsel %vm141_vm1, %v218_v52, 0.0  ;;  %v171_v5 = vsel %vm141_vm1, %v124_v2, 0.0  ;;  %v221_v6 = vmul.f32 %v119_v36, %v119_v36  ;;  %v258_v7 = vsel %vm141_vm1, %v219_v58, 0.0 }
  0x1f   : > { %v154_v26 = vadd.f32 %v153_v18, %v152_v20  ;;  %v251_v56 = vadd.f32 %v250_v47, %v249_v50  ;;  %v173_v11 = vsel %vm141_vm1, %v125_v8, 0.0  ;;  %v222_v12 = vmul.f32 %v120_v42, %v120_v42  ;;  %v127_v20 = vld [vmem:[%s461_s12 + $0x90] sm:$0xff]  ;;  %v132_v50 = vld [vmem:[%s461_s12 + $0xb8] sm:$0xff] }
  0x20   : > { %v260_v13 = vsel %vm141_vm1, %v220_v0, 0.0  ;;  %v175_v17 = vsel %vm141_vm1, %v126_v14, 0.0  ;;  %v223_v18 = vmul.f32 %v121_v48, %v121_v48  ;;  %v262_v19 = vsel %vm141_vm1, %v221_v6, 0.0 }
  0x21   : > { %v156_v30 = vadd.f32 %v155_v22, %v154_v26  ;;  %v253_v62 = vadd.f32 %v252_v53, %v251_v56  ;;  %v177_v23 = vsel %vm141_vm1, %v127_v20, 0.0  ;;  %v224_v24 = vmul.f32 %v122_v54, %v122_v54  ;;  %v128_v26 = vld [vmem:[%s461_s12 + $0x98] sm:$0xff]  ;;  %v133_v56 = vld [vmem:[%s461_s12 + $0xc0] sm:$0xff] }
  0x22   : > { %v264_v25 = vsel %vm141_vm1, %v222_v12, 0.0  ;;  %v179_v29 = vsel %vm141_vm1, %v128_v26, 0.0  ;;  %v266_v31 = vsel %vm141_vm1, %v223_v18, 0.0  ;;  %v226_v36 = vmul.f32 %v124_v2, %v124_v2 }
  0x23   : > { %v158_v37 = vadd.f32 %v157_v27, %v156_v30  ;;  %v255_v4 = vadd.f32 %v254_v59, %v253_v62  ;;  %v225_v30 = vmul.f32 %v123_v60, %v123_v60  ;;  %v183_v41 = vsel %vm141_vm1, %v130_v38, 0.0  ;;  %v134_v62 = vld [vmem:[%s461_s12 + $0xc8] sm:$0xff] }
  0x24   : > { %v227_v42 = vmul.f32 %v125_v8, %v125_v8  ;;  %v185_v47 = vsel %vm141_vm1, %v131_v44, 0.0  ;;  %v228_v48 = vmul.f32 %v126_v14, %v126_v14  ;;  %v187_v53 = vsel %vm141_vm1, %v132_v50, 0.0 }
  0x25   : > { %v160_v43 = vadd.f32 %v159_v32, %v158_v37  ;;  %v257_v10 = vadd.f32 %v256_v1, %v255_v4  ;;  %v129_v32 = vld [vmem:[%s461_s12 + $0xa0] sm:$0xff]  ;;  %v268_v37 = vsel %vm141_vm1, %v224_v24, 0.0  ;;  %v229_v54 = vmul.f32 %v127_v20, %v127_v20  ;;  %v135_v4 = vld [vmem:[%s461_s12 + $0xd0] sm:$0xff] }
  0x26   : > { %v181_v35 = vsel %vm141_vm1, %v129_v32, 0.0  ;;  %v189_v59 = vsel %vm141_vm1, %v133_v56, 0.0  ;;  %v230_v60 = vmul.f32 %v128_v26, %v128_v26  ;;  %v191_v1 = vsel %vm141_vm1, %v134_v62, 0.0 }
  0x27   : > { %v162_v49 = vadd.f32 %v161_v39, %v160_v43  ;;  %v259_v16 = vadd.f32 %v258_v7, %v257_v10  ;;  %v270_v43 = vsel %vm141_vm1, %v225_v30, 0.0  ;;  %v231_v2 = vmul.f32 %v129_v32, %v129_v32  ;;  %v136_v10 = vld [vmem:[%s461_s12 + $0xd8] sm:$0xff] }
  0x28   : > { %v193_v7 = vsel %vm141_vm1, %v135_v4, 0.0  ;;  %v232_v8 = vmul.f32 %v130_v38, %v130_v38  ;;  %v233_v14 = vmul.f32 %v131_v44, %v131_v44  ;;  %v234_v20 = vmul.f32 %v132_v50, %v132_v50 }
  0x29   : > { %v164_v55 = vadd.f32 %v163_v45, %v162_v49  ;;  %v261_v22 = vadd.f32 %v260_v13, %v259_v16  ;;  %v272_v49 = vsel %vm141_vm1, %v226_v36, 0.0  ;;  %v195_v13 = vsel %vm141_vm1, %v136_v10, 0.0  ;;  %v137_v16 = vld [vmem:[%s461_s12 + $0xe0] sm:$0xff] }
  0x2a   : > { %v235_v26 = vmul.f32 %v133_v56, %v133_v56  ;;  %v236_v32 = vmul.f32 %v134_v62, %v134_v62  ;;  %v237_v38 = vmul.f32 %v135_v4, %v135_v4  ;;  %vm316_vm3 = vcmask 25600  }
  0x2b   : > { %v166_v61 = vadd.f32 %v165_v51, %v164_v55  ;;  %v263_v28 = vadd.f32 %v262_v19, %v261_v22  ;;  %v274_v55 = vsel %vm141_vm1, %v227_v42, 0.0  ;;  %v197_v19 = vsel %vm141_vm1, %v137_v16, 0.0  ;;  %v138_v22 = vld [vmem:[%s461_s12 + $0xe8] sm:$0xff] }
  0x2c   : > { %v238_v42 = vmul.f32 %v136_v10, %v136_v10 }
  0x2d   : > { %v168_v3 = vadd.f32 %v167_v57, %v166_v61  ;;  %v265_v34 = vadd.f32 %v264_v25, %v263_v28  ;;  %v276_v61 = vsel %vm141_vm1, %v228_v48, 0.0  ;;  %v199_v25 = vsel %vm141_vm1, %v138_v22, 0.0  ;;  %v139_v28 = vld [vmem:[%s461_s12 + $0xf0] sm:$0xff] }
  0x2e   : > { %v296_v50 = vsel %vm141_vm1, %v238_v42, 0.0 }
  0x2f   : > { %v170_v9 = vadd.f32 %v169_v63, %v168_v3  ;;  %v267_v40 = vadd.f32 %v266_v31, %v265_v34  ;;  %v278_v3 = vsel %vm141_vm1, %v229_v54, 0.0  ;;  %v201_v31 = vsel %vm141_vm1, %v139_v28, 0.0  ;;  %v140_v34 = vld [vmem:[%s461_s12 + $0xf8] sm:$0xff] }
  0x30   : > { %v242_v56 = vmul.f32 %v140_v34, %v140_v34 }
  0x31   : > { %v172_v15 = vadd.f32 %v171_v5, %v170_v9  ;;  %v269_v46 = vadd.f32 %v268_v37, %v267_v40  ;;  %v280_v9 = vsel %vm141_vm1, %v230_v60, 0.0  ;;  %v203_v37 = vsel %vm141_vm1, %v140_v34, 0.0 }
  0x32   : > { %v304_v62 = vsel %vm141_vm1, %v242_v56, 0.0 }
  0x33   : > { %v174_v21 = vadd.f32 %v173_v11, %v172_v15  ;;  %v271_v52 = vadd.f32 %v270_v43, %v269_v46  ;;  %v282_v15 = vsel %vm141_vm1, %v231_v2, 0.0  ;;  %v292_v43 = vsel %vm141_vm1, %v236_v32, 0.0 }
  0x34   : > { %v239_v46 = vmul.f32 %v137_v16, %v137_v16 }
  0x35   : > { %v176_v27 = vadd.f32 %v175_v17, %v174_v21  ;;  %v273_v58 = vadd.f32 %v272_v49, %v271_v52  ;;  %v284_v21 = vsel %vm141_vm1, %v232_v8, 0.0  ;;  %v240_v49 = vmul.f32 %v138_v22, %v138_v22 }
  0x36   : > { %v298_v54 = vsel %vm141_vm1, %v239_v46, 0.0 }
  0x37   : > { %v178_v33 = vadd.f32 %v177_v23, %v176_v27  ;;  %v275_v0 = vadd.f32 %v274_v55, %v273_v58  ;;  %v286_v27 = vsel %vm141_vm1, %v233_v14, 0.0 }
  0x39   : > { %v180_v39 = vadd.f32 %v179_v29, %v178_v33  ;;  %v277_v6 = vadd.f32 %v276_v61, %v275_v0  ;;  %v288_v33 = vsel %vm141_vm1, %v234_v20, 0.0 }
  0x3b   : > { %v182_v45 = vadd.f32 %v181_v35, %v180_v39  ;;  %v279_v12 = vadd.f32 %v278_v3, %v277_v6  ;;  %v290_v39 = vsel %vm141_vm1, %v235_v26, 0.0 }
  0x3d   : > { %v184_v51 = vadd.f32 %v183_v41, %v182_v45  ;;  %v281_v18 = vadd.f32 %v280_v9, %v279_v12 }
  0x3f   : > { %v186_v57 = vadd.f32 %v185_v47, %v184_v51  ;;  %v283_v24 = vadd.f32 %v282_v15, %v281_v18  ;;  %v294_v47 = vsel %vm141_vm1, %v237_v38, 0.0 }
  0x41   : > { %v188_v63 = vadd.f32 %v187_v53, %v186_v57  ;;  %v285_v30 = vadd.f32 %v284_v21, %v283_v24  ;;  %v241_v53 = vmul.f32 %v139_v28, %v139_v28  ;;  %v300_v57 = vsel %vm141_vm1, %v240_v49, 0.0 }
  0x43   : > { %v190_v5 = vadd.f32 %v189_v59, %v188_v63  ;;  %v287_v36 = vadd.f32 %v286_v27, %v285_v30  ;;  %v302_v60 = vsel %vm141_vm1, %v241_v53, 0.0 }
  0x45   : > { %v192_v11 = vadd.f32 %v191_v1, %v190_v5  ;;  %v289_v41 = vadd.f32 %v288_v33, %v287_v36 }
  0x47   : > { %v194_v17 = vadd.f32 %v193_v7, %v192_v11  ;;  %v291_v45 = vadd.f32 %v290_v39, %v289_v41  ;;  %v312_v11 = vld [vmem:[#allocation2] sm:$0x3] }
  0x49   : > { %v196_v23 = vadd.f32 %v195_v13, %v194_v17  ;;  %v293_v48 = vadd.f32 %v292_v43, %v291_v45 }
  0x4b   : > { %v198_v29 = vadd.f32 %v197_v19, %v196_v23  ;;  %v295_v52 = vadd.f32 %v294_v47, %v293_v48 }
  0x4d   : > { %v200_v35 = vadd.f32 %v199_v25, %v198_v29  ;;  %v297_v55 = vadd.f32 %v296_v50, %v295_v52 }
  0x4f   : > { %v202_v40 = vadd.f32 %v201_v31, %v200_v35  ;;  %v299_v59 = vadd.f32 %v298_v54, %v297_v55 }
  0x51   : > { %v204_v44 = vadd.f32 %v203_v37, %v202_v40  ;;  %v301_v61 = vadd.f32 %v300_v57, %v299_v59 }
  0x53   : > { %v205_v51 = vrot.slane %v204_v44, 4  ;;  %v303_v0 = vadd.f32 %v302_v60, %v301_v61 }
  0x55   : > { %v206_v58 = vadd.f32 %v205_v51, %v204_v44  ;;  %v305_v1 = vadd.f32 %v304_v62, %v303_v0 }
  0x57   : > { %v207_v63 = vrot.slane %v206_v58, 2  ;;  %v306_v3 = vrot.slane %v305_v1, 4 }
  0x59   : > { %v208_v2 = vadd.f32 %v207_v63, %v206_v58  ;;  %v307_v4 = vadd.f32 %v306_v3, %v305_v1 }
  0x5b   : > { %v209_v5 = vrot.slane %v208_v2, 1  ;;  %v308_v6 = vrot.slane %v307_v4, 2 }
  0x5d   : > { %v309_v7 = vadd.f32 %v308_v6, %v307_v4  ;;  %v210_v8 = vadd.f32 %v209_v5, %v208_v2 }
  0x5f   : > { %v310_v9 = vrot.slane %v309_v7, 1 }
  0x61   : > { %v311_v10 = vadd.f32 %v310_v9, %v309_v7 }
  0x63   : > { %v314_v12 = vsel %vm313_vm2, %v210_v8, %v311_v10 }
  0x64   : > { %v315_v13 = vadd.f32 %v314_v12, %v312_v11 }
  0x66   : > { %317 = vst.msk [vmem:[#allocation2] sm:$0x3] %vm316_vm3, %v315_v13 }
  0x67   : > { %379 = dma.vmem_to_hbm [thread:$0]  (%p382_p5), %s325_s14, 32, %s327_s17, [#allocation3]  }
  0x68   : > { %427 = dma.done.wait (%p382_p5), [#allocation3], 32  }
  0x69   : > { %429 = vsyncadd (%p382_p5), [#allocation3], 4294967264 }
  0x6a PF: > { %s12_s6 = sadd.s32 1, %s432_s6  }
  0x6b   : > { %p9_p6 = scmp.ge.s32.totalorder %s12_s6, 4  }
  0x6d   :  { %11 = sbr.rel (!%p9_p6) target bundleno = 1 (0x1), region = 55 }
  0x72   :  { %340 = vsyncpa [#allocation3], 1 }
  0x73   :  { %342 = vsyncpa [#allocation3 + $0x1], 1 }

</bundles_post_ra>
